<compile_context>
chip_gen: v5e
topology: v5e:2x2
jax: 0.10.0
libtpu: 0.0.40
codegen_flags: <defaults>
</compile_context>

<pallas_src>
import functools

import jax
import jax.numpy as jnp
from jax.experimental import pallas as pl
from jax.experimental.pallas import tpu as pltpu

_LANE = 128
_SUBLANE = 8
_VMEM_LIMIT_BYTES = 48 * 1024 * 1024  # headroom under v7x's 64 MiB physical VMEM


def _round_up(n, m):
    return ((n + m - 1) // m) * m


def _mlp_head_kernel(x_ref, w1_ref, b1_ref, w2_ref, b2_ref, out_ref):
    # layer 1: bf16 operands, f32 accumulation on the MXU
    h = jnp.dot(x_ref[...], w1_ref[...], preferred_element_type=jnp.float32)
    # bias + ReLU epilogue in f32 (no bf16 VPU dependence; v5e-safe)
    h = jnp.maximum(h + b1_ref[...], 0.0)
    # layer 2: only the statically-selected head
    o = jnp.dot(h.astype(w2_ref.dtype), w2_ref[...],
                preferred_element_type=jnp.float32)
    out_ref[...] = (o + b2_ref[...]).astype(out_ref.dtype)


def prepare_single_input(params, i, out_dtype=jnp.float32):
    """One-time preparation mirroring SingleInput.__init__(model, i).

    Statically selects head `i`, casts weights to bf16 (MXU-native) and
    zero-pads contraction / output dims to the 128-lane width.  Doing this
    once hoists a full HBM read+write of every weight out of the per-call
    path (zero padding contributes exactly 0 to the f32 accumulators).
    """
    w1, b1, w2a, b2a, w2b, b2b = params
    w2, b2 = (w2a, b2a) if i == 0 else (w2b, b2b)

    D_in, H = w1.shape
    D_out = w2.shape[1]
    D_in_p = _round_up(D_in, _LANE)
    H_p = _round_up(H, _LANE)
    D_out_p = _round_up(D_out, _LANE)

    bf16, f32 = jnp.bfloat16, jnp.float32
    w1_p = jnp.zeros((D_in_p, H_p), bf16).at[:D_in, :H].set(w1.astype(bf16))
    b1_p = jnp.zeros((1, H_p), f32).at[:, :H].set(b1.astype(f32))
    w2_p = jnp.zeros((H_p, D_out_p), bf16).at[:H, :D_out].set(w2.astype(bf16))
    b2_p = jnp.zeros((1, D_out_p), f32).at[:, :D_out].set(b2.astype(f32))

    return (w1_p, b1_p, w2_p, b2_p), (int(D_out), jnp.dtype(out_dtype))


@functools.partial(jax.jit,
                   static_argnames=("d_out", "out_dtype", "single_buffer"))
def _forward_impl(x, w1_p, b1_p, w2_p, b2_p, *, d_out, out_dtype, single_buffer):
    B, D_in = x.shape
    D_in_p, H_p = w1_p.shape
    D_out_p = w2_p.shape[1]
    bf16 = jnp.bfloat16

    # Batch tile: multiples of 8 sublanes; keep >= 2 grid points when possible
    # so v7x's second TensorCore isn't idle; grow to 256 at large B to amortize
    # the ~0.35us per-grid-step overhead and the per-step weight pass.
    if B <= _SUBLANE:
        TM = B_p = _SUBLANE
    elif B <= _LANE:
        B_p = _round_up(B, 2 * _SUBLANE)
        TM = B_p // 2
    else:
        TM = 256 if B >= 2 * 256 else _LANE
        B_p = _round_up(B, TM)

    # Pad/cast x only when actually needed (skip the extra HBM copy otherwise).
    if (B, D_in) == (B_p, D_in_p) and x.dtype == bf16:
        x_p = x
    else:
        x_p = jnp.zeros((B_p, D_in_p), bf16).at[:B, :D_in].set(x.astype(bf16))

    # Resident weights (constant index_map) -> single pipeline buffer.
    def _resident_spec(shape):
        if single_buffer:
            return pl.BlockSpec(shape, lambda m: (0, 0),
                                pipeline_mode=pl.Buffered(1))
        return pl.BlockSpec(shape, lambda m: (0, 0))

    out_itemsize = jnp.dtype(out_dtype).itemsize
    cost = pl.CostEstimate(
        flops=2 * B_p * (D_in_p * H_p + H_p * D_out_p),
        transcendentals=0,
        bytes_accessed=(x_p.size * 2 + w1_p.size * 2 + w2_p.size * 2
                        + b1_p.size * 4 + b2_p.size * 4
                        + B_p * D_out_p * out_itemsize),
    )

    out_p = pl.pallas_call(
        _mlp_head_kernel,
        out_shape=jax.ShapeDtypeStruct((B_p, D_out_p), out_dtype),
        grid=(B_p // TM,),
        in_specs=[
            pl.BlockSpec((TM, D_in_p), lambda m: (m, 0)),   # x: batch-tiled
            _resident_spec((D_in_p, H_p)),                  # w1
            _resident_spec((1, H_p)),                       # b1
            _resident_spec((H_p, D_out_p)),                 # w2 (head i)
            _resident_spec((1, D_out_p)),                   # b2 (head i)
        ],
        out_specs=pl.BlockSpec((TM, D_out_p), lambda m: (m, 0)),
        compiler_params=pltpu.CompilerParams(
            dimension_semantics=("parallel",),  # batch tiles shard across TCs
            vmem_limit_bytes=_VMEM_LIMIT_BYTES,
        ),
        cost_estimate=cost,
    )(x_p, w1_p, b1_p, w2_p, b2_p)

    if (B_p, D_out_p) != (B, d_out):
        out_p = out_p[:B, :d_out]
    return out_p


def single_input_forward(x, prepared):
    """Pallas equivalent of SingleInput.forward (head selected in prepare)."""
    (w1_p, b1_p, w2_p, b2_p), (d_out, out_dtype) = prepared
    try:
        return _forward_impl(x, w1_p, b1_p, w2_p, b2_p,
                             d_out=d_out, out_dtype=out_dtype,
                             single_buffer=True)
    except Exception:
        # Fallback for JAX builds that reject single-buffered (Buffered(1))
        # block specs; default double-buffering is still correct.
        return _forward_impl(x, w1_p, b1_p, w2_p, b2_p,
                             d_out=d_out, out_dtype=out_dtype,
                             single_buffer=False)


def init_params(key, d_in, hidden, d_out):
    k1, k2, k3 = jax.random.split(key, 3)
    w1 = jax.random.normal(k1, (d_in, hidden), jnp.float32) * 0.05
    b1 = jnp.zeros((1, hidden), jnp.float32)
    w2a = jax.random.normal(k2, (hidden, d_out), jnp.float32) * 0.05
    b2a = jnp.full((1, d_out), 0.1, jnp.float32)
    w2b = jax.random.normal(k3, (hidden, d_out), jnp.float32) * 0.05
    b2b = jnp.full((1, d_out), -0.1, jnp.float32)
    return (w1, b1, w2a, b2a, w2b, b2b)


if __name__ == "__main__":
    key = jax.random.PRNGKey(0)
    kx, kp = jax.random.split(key)

    B, D_in, HID, D_out = 8, 32, 64, 16
    x = jax.random.normal(kx, (B, D_in), jnp.float32)
    params = init_params(kp, D_in, HID, D_out)

    i = 1  # SingleInput index (static)
    prepared = prepare_single_input(params, i, out_dtype=jnp.float32)
    prepared = jax.block_until_ready(prepared)  # one-time pad/cast, off hot path

    y = single_input_forward(x, prepared)
    y = jax.block_until_ready(y)
    assert y.shape == (B, D_out)

    # reference in plain JAX, mirroring the kernel's bf16-operand / f32-acc math
    w1, b1, w2a, b2a, w2b, b2b = params
    w2, b2 = (w2a, b2a) if i == 0 else (w2b, b2b)
    bf16 = jnp.bfloat16
    h_ref = jnp.maximum(
        jnp.dot(x.astype(bf16), w1.astype(bf16),
                preferred_element_type=jnp.float32) + b1, 0.0)
    ref = jnp.dot(h_ref.astype(bf16), w2.astype(bf16),
                  preferred_element_type=jnp.float32) + b2
    assert jnp.allclose(y, ref, atol=1e-3, rtol=1e-3), (
        float(jnp.max(jnp.abs(y - ref))))

    print("KERNEL_OK")
</pallas_src>

<mosaic_0001>
module attributes {stable_mosaic.version = 11 : i64} {
  func.func @_mlp_head_kernel(%arg0: i32, %arg1: memref<8x128xbf16, #tpu.memory_space<vmem>>, %arg2: memref<128x128xbf16, #tpu.memory_space<vmem>>, %arg3: memref<1x128xf32, #tpu.memory_space<vmem>>, %arg4: memref<128x128xbf16, #tpu.memory_space<vmem>>, %arg5: memref<1x128xf32, #tpu.memory_space<vmem>>, %arg6: memref<8x128xf32, #tpu.memory_space<vmem>>) attributes {dimension_semantics = [#tpu.dimension_semantics<parallel>], iteration_bounds = array<i64: 1>, scalar_prefetch = 0 : i64, scratch_operands = 0 : i64, tpu.core_type = #tpu.core_type<tc>, window_params = [{transform_indices = @transform_0, window_bounds = array<i64: 8, 128>}, {pipeline_mode = #tpu.pipeline_mode<synchronous>, transform_indices = @transform_1, window_bounds = array<i64: 128, 128>}, {pipeline_mode = #tpu.pipeline_mode<synchronous>, transform_indices = @transform_2, window_bounds = array<i64: 1, 128>}, {pipeline_mode = #tpu.pipeline_mode<synchronous>, transform_indices = @transform_3, window_bounds = array<i64: 128, 128>}, {pipeline_mode = #tpu.pipeline_mode<synchronous>, transform_indices = @transform_4, window_bounds = array<i64: 1, 128>}, {transform_indices = @transform_5, window_bounds = array<i64: 8, 128>}]} {
    %c0 = arith.constant 0 : index
    %c0_0 = arith.constant 0 : index
    %0 = vector.load %arg1[%c0, %c0_0] : memref<8x128xbf16, #tpu.memory_space<vmem>>, vector<8x128xbf16>
    %c0_1 = arith.constant 0 : index
    %c0_2 = arith.constant 0 : index
    %1 = vector.load %arg2[%c0_1, %c0_2] : memref<128x128xbf16, #tpu.memory_space<vmem>>, vector<128x128xbf16>
    %cst = arith.constant dense<0.000000e+00> : vector<8x128xf32>
    %2 = tpu.matmul %0, %1, %cst {dimension_numbers = #tpu.dot_dimension_numbers<[1], [0], [0], [1], [0, 0, 1, 1], [], []>} : vector<8x128xbf16>, vector<128x128xbf16>, vector<8x128xf32> -> vector<8x128xf32>
    %c0_3 = arith.constant 0 : index
    %c0_4 = arith.constant 0 : index
    %3 = vector.load %arg3[%c0_3, %c0_4] : memref<1x128xf32, #tpu.memory_space<vmem>>, vector<1x128xf32>
    %4 = vector.broadcast %3 : vector<1x128xf32> to vector<8x128xf32>
    %5 = arith.addf %2, %4 : vector<8x128xf32>
    %cst_5 = arith.constant 0.000000e+00 : f32
    %6 = vector.broadcast %cst_5 : f32 to vector<8x128xf32>
    %7 = arith.maximumf %5, %6 : vector<8x128xf32>
    %8 = arith.truncf %7 : vector<8x128xf32> to vector<8x128xbf16>
    %c0_6 = arith.constant 0 : index
    %c0_7 = arith.constant 0 : index
    %9 = vector.load %arg4[%c0_6, %c0_7] : memref<128x128xbf16, #tpu.memory_space<vmem>>, vector<128x128xbf16>
    %cst_8 = arith.constant dense<0.000000e+00> : vector<8x128xf32>
    %10 = tpu.matmul %8, %9, %cst_8 {dimension_numbers = #tpu.dot_dimension_numbers<[1], [0], [0], [1], [0, 0, 1, 1], [], []>} : vector<8x128xbf16>, vector<128x128xbf16>, vector<8x128xf32> -> vector<8x128xf32>
    %c0_9 = arith.constant 0 : index
    %c0_10 = arith.constant 0 : index
    %11 = vector.load %arg5[%c0_9, %c0_10] : memref<1x128xf32, #tpu.memory_space<vmem>>, vector<1x128xf32>
    %12 = vector.broadcast %11 : vector<1x128xf32> to vector<8x128xf32>
    %13 = arith.addf %10, %12 : vector<8x128xf32>
    %c0_11 = arith.constant 0 : index
    %c0_12 = arith.constant 0 : index
    %14 = vector.load %arg6[%c0_11, %c0_12] : memref<8x128xf32, #tpu.memory_space<vmem>>, vector<8x128xf32>
    tpu.vector_store %arg6[%c0_11, %c0_12], %13 {strides = array<i32>} : memref<8x128xf32, #tpu.memory_space<vmem>>, vector<8x128xf32>,
    return
  }
  func.func @transform_0(%arg0: i32) -> (i32, i32) {
    %c0_i32 = arith.constant 0 : i32
    %c0_i32_0 = arith.constant 0 : i32
    return %arg0, %c0_i32 : i32, i32
  }
  func.func @transform_1(%arg0: i32) -> (i32, i32) {
    %c0_i32 = arith.constant 0 : i32
    %c0_i32_0 = arith.constant 0 : i32
    %c0_i32_1 = arith.constant 0 : i32
    return %c0_i32, %c0_i32_0 : i32, i32
  }
  func.func @transform_2(%arg0: i32) -> (i32, i32) {
    %c0_i32 = arith.constant 0 : i32
    %c0_i32_0 = arith.constant 0 : i32
    %c0_i32_1 = arith.constant 0 : i32
    return %c0_i32, %c0_i32_0 : i32, i32
  }
  func.func @transform_3(%arg0: i32) -> (i32, i32) {
    %c0_i32 = arith.constant 0 : i32
    %c0_i32_0 = arith.constant 0 : i32
    %c0_i32_1 = arith.constant 0 : i32
    return %c0_i32, %c0_i32_0 : i32, i32
  }
  func.func @transform_4(%arg0: i32) -> (i32, i32) {
    %c0_i32 = arith.constant 0 : i32
    %c0_i32_0 = arith.constant 0 : i32
    %c0_i32_1 = arith.constant 0 : i32
    return %c0_i32, %c0_i32_0 : i32, i32
  }
  func.func @transform_5(%arg0: i32) -> (i32, i32) {
    %c0_i32 = arith.constant 0 : i32
    %c0_i32_0 = arith.constant 0 : i32
    return %arg0, %c0_i32 : i32, i32
  }
}

module attributes {stable_mosaic.version = 11 : i64} {
  func.func @_mlp_head_kernel(%arg0: i32, %arg1: memref<8x128xbf16, #tpu.memory_space<vmem>>, %arg2: memref<128x128xbf16, #tpu.memory_space<vmem>>, %arg3: memref<1x128xf32, #tpu.memory_space<vmem>>, %arg4: memref<128x128xbf16, #tpu.memory_space<vmem>>, %arg5: memref<1x128xf32, #tpu.memory_space<vmem>>, %arg6: memref<8x128xf32, #tpu.memory_space<vmem>>) attributes {dimension_semantics = [#tpu.dimension_semantics<parallel>], iteration_bounds = array<i64: 1>, scalar_prefetch = 0 : i64, scratch_operands = 0 : i64, tpu.core_type = #tpu.core_type<tc>, window_params = [{transform_indices = @transform_0, window_bounds = array<i64: 8, 128>}, {pipeline_mode = #tpu.pipeline_mode<synchronous>, transform_indices = @transform_1, window_bounds = array<i64: 128, 128>}, {pipeline_mode = #tpu.pipeline_mode<synchronous>, transform_indices = @transform_2, window_bounds = array<i64: 1, 128>}, {pipeline_mode = #tpu.pipeline_mode<synchronous>, transform_indices = @transform_3, window_bounds = array<i64: 128, 128>}, {pipeline_mode = #tpu.pipeline_mode<synchronous>, transform_indices = @transform_4, window_bounds = array<i64: 1, 128>}, {transform_indices = @transform_5, window_bounds = array<i64: 8, 128>}]} {
    %c0 = arith.constant 0 : index
    %c0_0 = arith.constant 0 : index
    %0 = vector.load %arg1[%c0, %c0_0] : memref<8x128xbf16, #tpu.memory_space<vmem>>, vector<8x128xbf16>
    %c0_1 = arith.constant 0 : index
    %c0_2 = arith.constant 0 : index
    %1 = vector.load %arg2[%c0_1, %c0_2] : memref<128x128xbf16, #tpu.memory_space<vmem>>, vector<128x128xbf16>
    %cst = arith.constant dense<0.000000e+00> : vector<8x128xf32>
    %2 = tpu.matmul %0, %1, %cst {dimension_numbers = #tpu.dot_dimension_numbers<[1], [0], [0], [1], [0, 0, 1, 1], [], []>} : vector<8x128xbf16>, vector<128x128xbf16>, vector<8x128xf32> -> vector<8x128xf32>
    %c0_3 = arith.constant 0 : index
    %c0_4 = arith.constant 0 : index
    %3 = vector.load %arg3[%c0_3, %c0_4] : memref<1x128xf32, #tpu.memory_space<vmem>>, vector<1x128xf32>
    %4 = vector.broadcast %3 : vector<1x128xf32> to vector<8x128xf32>
    %5 = arith.addf %2, %4 : vector<8x128xf32>
    %cst_5 = arith.constant 0.000000e+00 : f32
    %6 = vector.broadcast %cst_5 : f32 to vector<8x128xf32>
    %7 = arith.maximumf %5, %6 : vector<8x128xf32>
    %8 = arith.truncf %7 : vector<8x128xf32> to vector<8x128xbf16>
    %c0_6 = arith.constant 0 : index
    %c0_7 = arith.constant 0 : index
    %9 = vector.load %arg4[%c0_6, %c0_7] : memref<128x128xbf16, #tpu.memory_space<vmem>>, vector<128x128xbf16>
    %cst_8 = arith.constant dense<0.000000e+00> : vector<8x128xf32>
    %10 = tpu.matmul %8, %9, %cst_8 {dimension_numbers = #tpu.dot_dimension_numbers<[1], [0], [0], [1], [0, 0, 1, 1], [], []>} : vector<8x128xbf16>, vector<128x128xbf16>, vector<8x128xf32> -> vector<8x128xf32>
    %c0_9 = arith.constant 0 : index
    %c0_10 = arith.constant 0 : index
    %11 = vector.load %arg5[%c0_9, %c0_10] : memref<1x128xf32, #tpu.memory_space<vmem>>, vector<1x128xf32>
    %12 = vector.broadcast %11 : vector<1x128xf32> to vector<8x128xf32>
    %13 = arith.addf %10, %12 : vector<8x128xf32>
    %c0_11 = arith.constant 0 : index
    %c0_12 = arith.constant 0 : index
    %14 = vector.load %arg6[%c0_11, %c0_12] : memref<8x128xf32, #tpu.memory_space<vmem>>, vector<8x128xf32>
    tpu.vector_store %arg6[%c0_11, %c0_12], %13 {strides = array<i32>} : memref<8x128xf32, #tpu.memory_space<vmem>>, vector<8x128xf32>,
    return
  }
  func.func @transform_0(%arg0: i32) -> (i32, i32) {
    %c0_i32 = arith.constant 0 : i32
    %c0_i32_0 = arith.constant 0 : i32
    return %arg0, %c0_i32 : i32, i32
  }
  func.func @transform_1(%arg0: i32) -> (i32, i32) {
    %c0_i32 = arith.constant 0 : i32
    %c0_i32_0 = arith.constant 0 : i32
    %c0_i32_1 = arith.constant 0 : i32
    return %c0_i32, %c0_i32_0 : i32, i32
  }
  func.func @transform_2(%arg0: i32) -> (i32, i32) {
    %c0_i32 = arith.constant 0 : i32
    %c0_i32_0 = arith.constant 0 : i32
    %c0_i32_1 = arith.constant 0 : i32
    return %c0_i32, %c0_i32_0 : i32, i32
  }
  func.func @transform_3(%arg0: i32) -> (i32, i32) {
    %c0_i32 = arith.constant 0 : i32
    %c0_i32_0 = arith.constant 0 : i32
    %c0_i32_1 = arith.constant 0 : i32
    return %c0_i32, %c0_i32_0 : i32, i32
  }
  func.func @transform_4(%arg0: i32) -> (i32, i32) {
    %c0_i32 = arith.constant 0 : i32
    %c0_i32_0 = arith.constant 0 : i32
    %c0_i32_1 = arith.constant 0 : i32
    return %c0_i32, %c0_i32_0 : i32, i32
  }
  func.func @transform_5(%arg0: i32) -> (i32, i32) {
    %c0_i32 = arith.constant 0 : i32
    %c0_i32_0 = arith.constant 0 : i32
    return %arg0, %c0_i32 : i32, i32
  }
}

</mosaic_0001>

<bundles_post_ra>
// kernel: _forward_impl.1
= control target key start
LH: loop header
LB: loop body
LE: loop exit
PB: predicated region body
PF: predicated region fallthrough
CT: control target
= control target key end

     0   :  { %10 = vsyncpa [#allocation3], 0  ;;  %s455_s0 = inlined_call_operand.vmem [shape: bf16[8,128], index: 0, kind: input, shape index: {}]   ;;  %s456_s1 = inlined_call_operand.hbm [shape: bf16[128,128], index: 1, kind: input, shape index: {}]   ;;  %s457_s2 = inlined_call_operand.vmem [shape: f32[1,128], index: 2, kind: input, shape index: {}]   ;;  %s458_s3 = inlined_call_operand.hbm [shape: bf16[128,128], index: 3, kind: input, shape index: {}]   ;;  %s459_s4 = inlined_call_operand.vmem [shape: f32[1,128], index: 4, kind: input, shape index: {}]   ;;  %s460_s5 = inlined_call_operand.hbm [shape: f32[8,128], index: 5, kind: output, shape index: {}]  }
   0x1   :  { %11 = vsyncpa [#allocation6], 0 }
   0x2   :  { %12 = vsyncpa [#allocation4], 0  ;;  %s19_s20 = sshll.u32 %s456_s1, 4  ;;  %s402_s21 = smov [#allocation2]   ;;  %s20_s20 = int_to_ptr.hbm [resolvable:$true] %s19_s20 }
   0x3   :  { %s21_s22 = sshll.u32 %s402_s21, 4  ;;  %s34_s25 = sshll.u32 %s458_s3, 4  ;;  %s22_s22 = int_to_ptr.vmem [resolvable:$true] %s21_s22  ;;  %s35_s25 = int_to_ptr.hbm [resolvable:$true] %s34_s25 }
   0x4   :  { %s403_s26 = smov 64   ;;  %s404_s27 = smov 4  }
   0x5   :  { %27 = dma.hbm_to_vmem [thread:$0]  %s20_s20, 1024, %s22_s22, [#allocation3], %s403_s26, %s403_s26, %s404_s27  }
   0x6   :  { %s405_s28 = smov [#allocation5]  }
   0x7   :  { %s36_s29 = sshll.u32 %s405_s28, 4  ;;  %s37_s29 = int_to_ptr.vmem [resolvable:$true] %s36_s29 }
   0x8   :  { %42 = dma.hbm_to_vmem [thread:$0]  %s35_s25, 1024, %s37_s29, [#allocation6], %s403_s26, %s403_s26, %s404_s27  }
   0x9   :  { %396 = dma.done.wait [#allocation3], 1024  }
   0xa   :  { %397 = vsyncadd [#allocation3], 4294966272 }
   0xb   :  { %398 = dma.done.wait [#allocation6], 1024  }
   0xc   :  { %399 = vsyncadd [#allocation6], 4294966272  ;;  %v308_v0 = vld [vmem:[#allocation2 + $0x38] sm:$0xff]  ;;  %v307_v1 = vld [vmem:[#allocation2 + $0x30] sm:$0xff]  ;;  %s226_s12 = sshll.u32 %s460_s5, 4  ;;  %s227_s12 = int_to_ptr.hbm [resolvable:$true] %s226_s12 }
   0xd   :  { %122 = vmatpush.bf16.msra.mxu0 %v308_v0  ;;  %v316_v2 = vld [vmem:[#allocation5 + $0x38] sm:$0xff]  ;;  %v315_v3 = vld [vmem:[#allocation5 + $0x30] sm:$0xff]  ;;  %v306_v4 = vld [vmem:[#allocation2 + $0x28] sm:$0xff] }
   0xe   :  { %205 = vmatpush.bf16.msra.mxu1 %v316_v2  ;;  %v314_v5 = vld [vmem:[#allocation5 + $0x28] sm:$0xff]  ;;  %v305_v6 = vld [vmem:[#allocation2 + $0x20] sm:$0xff]  ;;  %v304_v8 = vld [vmem:[#allocation2 + $0x18] sm:$0xff] }
   0xf   :  { %v313_v7 = vld [vmem:[#allocation5 + $0x20] sm:$0xff]  ;;  %v312_v9 = vld [vmem:[#allocation5 + $0x18] sm:$0xff]  ;;  %v303_v10 = vld [vmem:[#allocation2 + $0x10] sm:$0xff] }
  0x10   :  { %v311_v11 = vld [vmem:[#allocation5 + $0x10] sm:$0xff]  ;;  %v302_v12 = vld [vmem:[#allocation2 + $0x8] sm:$0xff]  ;;  %v301_v13 = vld [vmem:[#allocation2] sm:$0xff] }
  0x11   :  { %123 = vmatpush.bf16.msra.mxu0 %v307_v1  ;;  %v53_v14 = vld [vmem:[%s455_s0] sm:$0xf]  ;;  %v310_v15 = vld [vmem:[#allocation5 + $0x8] sm:$0xff]  ;;  %s406_s0 = smov [#allocation7]  }
  0x12   :  { %206 = vmatpush.bf16.msra.mxu1 %v315_v3  ;;  %v309_v16 = vld [vmem:[#allocation5] sm:$0xff]  ;;  %s224_s9 = sshll.u32 %s406_s0, 4  ;;  %s225_s9 = int_to_ptr.vmem [resolvable:$true] %s224_s9 }
  0x13   :  { %v322_v17 = vld [vmem:[%s457_s2] ss:$0 sm:$0xff] }
  0x14   :  { %v323_v23 = vld [vmem:[%s459_s4] ss:$0 sm:$0xff] }
  0x15   :  { %124 = vmatpush.bf16.msra.mxu0 %v306_v4 }
  0x16   :  { %207 = vmatpush.bf16.msra.mxu1 %v314_v5 }
  0x19   :  { %125 = vmatpush.bf16.msra.mxu0 %v305_v6 }
  0x1a   :  { %208 = vmatpush.bf16.msra.mxu1 %v313_v7 }
  0x1d   :  { %126 = vmatpush.bf16.msra.mxu0 %v304_v8 }
  0x1e   :  { %209 = vmatpush.bf16.msra.mxu1 %v312_v9 }
  0x21   :  { %127 = vmatpush.bf16.msra.mxu0 %v303_v10 }
  0x22   :  { %210 = vmatpush.bf16.msra.mxu1 %v311_v11 }
  0x25   :  { %128 = vmatpush.bf16.msra.mxu0 %v302_v12 }
  0x26   :  { %211 = vmatpush.bf16.msra.mxu1 %v310_v15 }
  0x29   :  { %129 = vmatpush.bf16.msra.mxu0 %v301_v13 }
  0x2a   :  { %212 = vmatpush.bf16.msra.mxu1 %v309_v16 }
  0x2c   :  { %130 = vmatmul.bf16.vlgmr.msra.gmra.mxu0 %v53_v14 }
  0xa9   :  { %v131_v18 = vpop.f32.mrf.mxu0 }
  0xaa   :  { %v132_v19 = vadd.f32 %v322_v17, %v131_v18 }
  0xac   :  { %v135_v20 = vmax.f32 %v132_v19, 0.0 }
  0xae   :  { %v136_v21 = vpack.c.bf16 %v135_v20, %v135_v20 }
  0xb0   :  { %213 = vmatmul.bf16.vlgmr.msra.gmra.mxu1 %v136_v21 }
  0xb1   :  { %v133_v22 = vpop.f32.mrf.mxu0 }
 0x12d   :  { %v214_v24 = vpop.f32.mrf.mxu1 }
 0x12e   :  { %v215_v25 = vadd.f32 %v323_v23, %v214_v24 }
 0x130   :  { %218 = vst [vmem:[#allocation7] sm:$0xff] %v215_v25 }
 0x131   :  { %229 = dma.vmem_to_hbm [thread:$0]  %s225_s9, 128, %s227_s12, [#allocation4]  }
 0x135   :  { %v216_v26 = vpop.f32.mrf.mxu1 }
 0x136   :  { %400 = dma.done.wait [#allocation4], 128  }
 0x137   :  { %401 = vsyncadd [#allocation4], 4294967168 }
 0x138   :  { %234 = vsyncpa [#allocation3], 1 }
 0x139   :  { %235 = vsyncpa [#allocation6], 1 }
 0x13a   :  { %236 = vsyncpa [#allocation4], 1 }

// kernel: _forward_impl.1
= control target key start
LH: loop header
LB: loop body
LE: loop exit
PB: predicated region body
PF: predicated region fallthrough
CT: control target
= control target key end

     0   :  { %10 = vsyncpa [#allocation3], 0  ;;  %s455_s0 = inlined_call_operand.vmem [shape: bf16[8,128], index: 0, kind: input, shape index: {}]   ;;  %s456_s1 = inlined_call_operand.hbm [shape: bf16[128,128], index: 1, kind: input, shape index: {}]   ;;  %s457_s2 = inlined_call_operand.vmem [shape: f32[1,128], index: 2, kind: input, shape index: {}]   ;;  %s458_s3 = inlined_call_operand.hbm [shape: bf16[128,128], index: 3, kind: input, shape index: {}]   ;;  %s459_s4 = inlined_call_operand.vmem [shape: f32[1,128], index: 4, kind: input, shape index: {}]   ;;  %s460_s5 = inlined_call_operand.hbm [shape: f32[8,128], index: 5, kind: output, shape index: {}]  }
   0x1   :  { %11 = vsyncpa [#allocation6], 0 }
   0x2   :  { %12 = vsyncpa [#allocation4], 0  ;;  %s19_s20 = sshll.u32 %s456_s1, 4  ;;  %s402_s21 = smov [#allocation2]   ;;  %s20_s20 = int_to_ptr.hbm [resolvable:$true] %s19_s20 }
   0x3   :  { %s21_s22 = sshll.u32 %s402_s21, 4  ;;  %s34_s25 = sshll.u32 %s458_s3, 4  ;;  %s22_s22 = int_to_ptr.vmem [resolvable:$true] %s21_s22  ;;  %s35_s25 = int_to_ptr.hbm [resolvable:$true] %s34_s25 }
   0x4   :  { %s403_s26 = smov 64   ;;  %s404_s27 = smov 4  }
   0x5   :  { %27 = dma.hbm_to_vmem [thread:$0]  %s20_s20, 1024, %s22_s22, [#allocation3], %s403_s26, %s403_s26, %s404_s27  }
   0x6   :  { %s405_s28 = smov [#allocation5]  }
   0x7   :  { %s36_s29 = sshll.u32 %s405_s28, 4  ;;  %s37_s29 = int_to_ptr.vmem [resolvable:$true] %s36_s29 }
   0x8   :  { %42 = dma.hbm_to_vmem [thread:$0]  %s35_s25, 1024, %s37_s29, [#allocation6], %s403_s26, %s403_s26, %s404_s27  }
   0x9   :  { %396 = dma.done.wait [#allocation3], 1024  }
   0xa   :  { %397 = vsyncadd [#allocation3], 4294966272 }
   0xb   :  { %398 = dma.done.wait [#allocation6], 1024  }
   0xc   :  { %399 = vsyncadd [#allocation6], 4294966272  ;;  %v308_v0 = vld [vmem:[#allocation2 + $0x38] sm:$0xff]  ;;  %v307_v1 = vld [vmem:[#allocation2 + $0x30] sm:$0xff]  ;;  %s226_s12 = sshll.u32 %s460_s5, 4  ;;  %s227_s12 = int_to_ptr.hbm [resolvable:$true] %s226_s12 }
   0xd   :  { %122 = vmatpush.bf16.msra.mxu0 %v308_v0  ;;  %v316_v2 = vld [vmem:[#allocation5 + $0x38] sm:$0xff]  ;;  %v315_v3 = vld [vmem:[#allocation5 + $0x30] sm:$0xff]  ;;  %v306_v4 = vld [vmem:[#allocation2 + $0x28] sm:$0xff] }
   0xe   :  { %205 = vmatpush.bf16.msra.mxu1 %v316_v2  ;;  %v314_v5 = vld [vmem:[#allocation5 + $0x28] sm:$0xff]  ;;  %v305_v6 = vld [vmem:[#allocation2 + $0x20] sm:$0xff]  ;;  %v304_v8 = vld [vmem:[#allocation2 + $0x18] sm:$0xff] }
   0xf   :  { %v313_v7 = vld [vmem:[#allocation5 + $0x20] sm:$0xff]  ;;  %v312_v9 = vld [vmem:[#allocation5 + $0x18] sm:$0xff]  ;;  %v303_v10 = vld [vmem:[#allocation2 + $0x10] sm:$0xff] }
  0x10   :  { %v311_v11 = vld [vmem:[#allocation5 + $0x10] sm:$0xff]  ;;  %v302_v12 = vld [vmem:[#allocation2 + $0x8] sm:$0xff]  ;;  %v301_v13 = vld [vmem:[#allocation2] sm:$0xff] }
  0x11   :  { %123 = vmatpush.bf16.msra.mxu0 %v307_v1  ;;  %v53_v14 = vld [vmem:[%s455_s0] sm:$0xf]  ;;  %v310_v15 = vld [vmem:[#allocation5 + $0x8] sm:$0xff]  ;;  %s406_s0 = smov [#allocation7]  }
  0x12   :  { %206 = vmatpush.bf16.msra.mxu1 %v315_v3  ;;  %v309_v16 = vld [vmem:[#allocation5] sm:$0xff]  ;;  %s224_s9 = sshll.u32 %s406_s0, 4  ;;  %s225_s9 = int_to_ptr.vmem [resolvable:$true] %s224_s9 }
  0x13   :  { %v322_v17 = vld [vmem:[%s457_s2] ss:$0 sm:$0xff] }
  0x14   :  { %v323_v23 = vld [vmem:[%s459_s4] ss:$0 sm:$0xff] }
  0x15   :  { %124 = vmatpush.bf16.msra.mxu0 %v306_v4 }
  0x16   :  { %207 = vmatpush.bf16.msra.mxu1 %v314_v5 }
  0x19   :  { %125 = vmatpush.bf16.msra.mxu0 %v305_v6 }
  0x1a   :  { %208 = vmatpush.bf16.msra.mxu1 %v313_v7 }
  0x1d   :  { %126 = vmatpush.bf16.msra.mxu0 %v304_v8 }
  0x1e   :  { %209 = vmatpush.bf16.msra.mxu1 %v312_v9 }
  0x21   :  { %127 = vmatpush.bf16.msra.mxu0 %v303_v10 }
  0x22   :  { %210 = vmatpush.bf16.msra.mxu1 %v311_v11 }
  0x25   :  { %128 = vmatpush.bf16.msra.mxu0 %v302_v12 }
  0x26   :  { %211 = vmatpush.bf16.msra.mxu1 %v310_v15 }
  0x29   :  { %129 = vmatpush.bf16.msra.mxu0 %v301_v13 }
  0x2a   :  { %212 = vmatpush.bf16.msra.mxu1 %v309_v16 }
  0x2c   :  { %130 = vmatmul.bf16.vlgmr.msra.gmra.mxu0 %v53_v14 }
  0xa9   :  { %v131_v18 = vpop.f32.mrf.mxu0 }
  0xaa   :  { %v132_v19 = vadd.f32 %v322_v17, %v131_v18 }
  0xac   :  { %v135_v20 = vmax.f32 %v132_v19, 0.0 }
  0xae   :  { %v136_v21 = vpack.c.bf16 %v135_v20, %v135_v20 }
  0xb0   :  { %213 = vmatmul.bf16.vlgmr.msra.gmra.mxu1 %v136_v21 }
  0xb1   :  { %v133_v22 = vpop.f32.mrf.mxu0 }
 0x12d   :  { %v214_v24 = vpop.f32.mrf.mxu1 }
 0x12e   :  { %v215_v25 = vadd.f32 %v323_v23, %v214_v24 }
 0x130   :  { %218 = vst [vmem:[#allocation7] sm:$0xff] %v215_v25 }
 0x131   :  { %229 = dma.vmem_to_hbm [thread:$0]  %s225_s9, 128, %s227_s12, [#allocation4]  }
 0x135   :  { %v216_v26 = vpop.f32.mrf.mxu1 }
 0x136   :  { %400 = dma.done.wait [#allocation4], 128  }
 0x137   :  { %401 = vsyncadd [#allocation4], 4294967168 }
 0x138   :  { %234 = vsyncpa [#allocation3], 1 }
 0x139   :  { %235 = vsyncpa [#allocation6], 1 }
 0x13a   :  { %236 = vsyncpa [#allocation4], 1 }

</bundles_post_ra>
